<compile_context>
chip_gen: v7x
topology: tpu7x:2x2x1
jax: 0.10.0
libtpu: 0.0.40
codegen_flags: <defaults>
</compile_context>

<pallas_src>
import functools
import math

import jax
import jax.numpy as jnp
from jax.experimental import pallas as pl
from jax.experimental.pallas import tpu as pltpu


def channel_attention_kernel(x_ref, w1t_ref, w2t_ref, o_ref, *, inv_hw):
    """One batch block per grid step.

    x_ref   : (Nb, C, H*W)  lane-dense flattened images
    w1t_ref : (C, Chid)     fc1 weight, transposed (1x1 conv, no bias)
    w2t_ref : (Chid, C)     fc2 weight, transposed (1x1 conv, no bias)
    o_ref   : (Nb, C)       channel attention (reshaped to (N, C, 1, 1) outside)
    """
    nb = x_ref.shape[0]
    x = x_ref[...].astype(jnp.float32)                 # (Nb, C, HW)

    # Global average / max pooling: lane (last-axis) reductions over the block.
    avg = jnp.sum(x, axis=-1) * inv_hw                 # (Nb, C)
    mx = jnp.max(x, axis=-1)                           # (Nb, C)

    # Shared MLP (fc1 -> ReLU -> fc2) on both pooled tiles at once:
    # stack to (2*Nb, C) so the MXU sees dense matmuls.
    p = jnp.concatenate([avg, mx], axis=0)             # (2*Nb, C)
    h = jnp.dot(p, w1t_ref[...], preferred_element_type=jnp.float32)   # (2*Nb, Chid)
    h = jnp.maximum(h, 0.0)
    z2 = jnp.dot(h, w2t_ref[...], preferred_element_type=jnp.float32)  # (2*Nb, C)

    z = z2[:nb] + z2[nb:]                              # (Nb, C)
    # Exact sigmoid (exp on the EUP); output stays within reference tolerance.
    o_ref[...] = (1.0 / (1.0 + jnp.exp(-z))).astype(o_ref.dtype)


def _pick_batch_block(n, c, hw, itemsize):
    """Batch-block size: as many samples per step as a ~8 MiB VMEM buffer
    allows (Pallas double-buffers it -> ~16 MiB, safe on v7x's 64 MiB VMEM),
    8-aligned when tiling, and split into >=2 steps for large batches so a
    "parallel" grid can use both v7x TensorCores."""
    budget = 8 * 1024 * 1024
    nb = max(1, budget // max(c * hw * itemsize, 1))
    if nb >= n:
        if n < 16:
            return n                       # tiny batch: one full-batch block
        nb = (n + 1) // 2                  # whole batch fits: make 2 parallel steps
    return max(8, (nb // 8) * 8)           # 8-aligned sublane block size


def channel_attention_forward(x, w1, w2):
    """ChannelAttention.forward.

    x  : (N, C, H, W)            NCHW
    w1 : (C // 16, C, 1, 1)      fc1 weight (PyTorch OIHW, bias=False)
    w2 : (C, C // 16, 1, 1)      fc2 weight (PyTorch OIHW, bias=False)
    returns (N, C, 1, 1)
    """
    n, c, h, w = x.shape
    chid = w1.shape[0]
    hw = h * w

    # Lane-dense flattened input; transposed 2-D f32 weight slabs (pre-cast in
    # the wrapper so the kernel body has no per-step weight casts).
    x_flat = x.reshape(n, c, hw)
    w1t = w1.reshape(chid, c).T.astype(jnp.float32)    # (C, Chid)
    w2t = w2.reshape(c, chid).T.astype(jnp.float32)    # (Chid, C)

    nb = _pick_batch_block(n, c, hw, x.dtype.itemsize)
    n_blocks = pl.cdiv(n, nb)
    n_pad = n_blocks * nb
    if n_pad != n:
        # Zero-pad the batch axis only; pooling is per-sample along HW, so
        # padded rows produce garbage that is sliced off below.
        x_flat = jnp.pad(x_flat, ((0, n_pad - n), (0, 0), (0, 0)))

    kernel = functools.partial(channel_attention_kernel, inv_hw=1.0 / float(hw))

    out = pl.pallas_call(
        kernel,
        out_shape=jax.ShapeDtypeStruct((n_pad, c), x.dtype),
        grid_spec=pl.GridSpec(
            grid=(n_blocks,),
            in_specs=[
                pl.BlockSpec((nb, c, hw), lambda i: (i, 0, 0)),
                pl.BlockSpec((c, chid), lambda i: (0, 0)),   # resident weights
                pl.BlockSpec((chid, c), lambda i: (0, 0)),
            ],
            out_specs=pl.BlockSpec((nb, c), lambda i: (i, 0)),
        ),
        compiler_params=pltpu.CompilerParams(
            # Batch blocks are independent -> shard across v7x's 2 TensorCores.
            dimension_semantics=("parallel",),
            # Headroom above the 16/32 MiB scoped defaults; blocks are budgeted
            # to stay well under this on every generation (incl. v7x 64 MiB).
            vmem_limit_bytes=48 * 1024 * 1024,
        ),
    )(x_flat, w1t, w2t)

    return out[:n].reshape(n, c, 1, 1)


def channel_attention_reference(x, w1, w2):
    """Pure-JAX reference matching the PyTorch module."""
    avg = jnp.mean(x, axis=(2, 3), keepdims=True)
    mx = jnp.max(x, axis=(2, 3), keepdims=True)

    def mlp(p):
        h = jax.lax.conv_general_dilated(
            p, w1, window_strides=(1, 1), padding="VALID",
            dimension_numbers=("NCHW", "OIHW", "NCHW"))
        h = jnp.maximum(h, 0.0)
        return jax.lax.conv_general_dilated(
            h, w2, window_strides=(1, 1), padding="VALID",
            dimension_numbers=("NCHW", "OIHW", "NCHW"))

    return jax.nn.sigmoid(mlp(avg) + mlp(mx))


if __name__ == "__main__":
    # ChannelAttention(in_planes=32): hidden = 32 // 16 = 2.  Small shapes.
    N, C, H, W = 2, 32, 16, 16
    CHID = C // 16

    key = jax.random.PRNGKey(0)
    kx, k1, k2 = jax.random.split(key, 3)

    x = jax.random.normal(kx, (N, C, H, W), dtype=jnp.float32)

    # Deterministic PyTorch-style uniform init for the two bias-free 1x1 convs.
    b1 = 1.0 / math.sqrt(C * 1 * 1)
    b2 = 1.0 / math.sqrt(CHID * 1 * 1)
    w1 = jax.random.uniform(k1, (CHID, C, 1, 1), jnp.float32, -b1, b1)
    w2 = jax.random.uniform(k2, (C, CHID, 1, 1), jnp.float32, -b2, b2)

    out = channel_attention_forward(x, w1, w2)
    out = jax.block_until_ready(out)

    ref = channel_attention_reference(x, w1, w2)
    assert out.shape == (N, C, 1, 1), out.shape
    assert jnp.allclose(out, ref, atol=1e-4, rtol=1e-4), "mismatch vs reference"

    print("KERNEL_OK")
</pallas_src>

<mosaic_0001>
module attributes {stable_mosaic.version = 11 : i64} {
  func.func @channel_attention_kernel(%arg0: i32, %arg1: memref<2x32x256xf32, #tpu.memory_space<vmem>>, %arg2: memref<32x2xf32, #tpu.memory_space<vmem>>, %arg3: memref<2x32xf32, #tpu.memory_space<vmem>>, %arg4: memref<2x32xf32, #tpu.memory_space<vmem>>) attributes {dimension_semantics = [#tpu.dimension_semantics<parallel>], iteration_bounds = array<i64: 1>, scalar_prefetch = 0 : i64, scratch_operands = 0 : i64, tpu.core_type = #tpu.core_type<tc>, window_params = [{transform_indices = @transform_0, window_bounds = array<i64: 2, 32, 256>}, {pipeline_mode = #tpu.pipeline_mode<synchronous>, transform_indices = @transform_1, window_bounds = array<i64: 32, 2>}, {pipeline_mode = #tpu.pipeline_mode<synchronous>, transform_indices = @transform_2, window_bounds = array<i64: 2, 32>}, {transform_indices = @transform_3, window_bounds = array<i64: 2, 32>}]} {
    %c0 = arith.constant 0 : index
    %c0_0 = arith.constant 0 : index
    %c0_1 = arith.constant 0 : index
    %0 = vector.load %arg1[%c0, %c0_0, %c0_1] : memref<2x32x256xf32, #tpu.memory_space<vmem>>, vector<2x32x256xf32>
    %cst = arith.constant dense<0.000000e+00> : vector<2x32xf32>
    %1 = vector.multi_reduction <add>, %0, %cst [2] : vector<2x32x256xf32> to vector<2x32xf32>
    %cst_2 = arith.constant 3.906250e-03 : f32
    %2 = vector.broadcast %cst_2 : f32 to vector<2x32xf32>
    %3 = arith.mulf %1, %2 : vector<2x32xf32>
    %cst_3 = arith.constant dense<0xFF800000> : vector<2x32xf32>
    %4 = vector.multi_reduction <maximumf>, %0, %cst_3 [2] : vector<2x32x256xf32> to vector<2x32xf32>
    %5 = tpu.concatenate %3, %4 in 0 : vector<2x32xf32>, vector<2x32xf32> -> vector<4x32xf32>
    %c0_4 = arith.constant 0 : index
    %c0_5 = arith.constant 0 : index
    %6 = vector.load %arg2[%c0_4, %c0_5] : memref<32x2xf32, #tpu.memory_space<vmem>>, vector<32x2xf32>
    %cst_6 = arith.constant dense<0.000000e+00> : vector<4x2xf32>
    %7 = tpu.matmul %5, %6, %cst_6 {dimension_numbers = #tpu.dot_dimension_numbers<[1], [0], [0], [1], [0, 0, 1, 1], [], []>} : vector<4x32xf32>, vector<32x2xf32>, vector<4x2xf32> -> vector<4x2xf32>
    %cst_7 = arith.constant 0.000000e+00 : f32
    %8 = vector.broadcast %cst_7 : f32 to vector<4x2xf32>
    %9 = arith.maximumf %7, %8 : vector<4x2xf32>
    %c0_8 = arith.constant 0 : index
    %c0_9 = arith.constant 0 : index
    %10 = vector.load %arg3[%c0_8, %c0_9] : memref<2x32xf32, #tpu.memory_space<vmem>>, vector<2x32xf32>
    %cst_10 = arith.constant dense<0.000000e+00> : vector<4x32xf32>
    %11 = tpu.matmul %9, %10, %cst_10 {dimension_numbers = #tpu.dot_dimension_numbers<[1], [0], [0], [1], [0, 0, 1, 1], [], []>} : vector<4x2xf32>, vector<2x32xf32>, vector<4x32xf32> -> vector<4x32xf32>
    %12 = vector.extract_strided_slice %11 {offsets = [0, 0], sizes = [2, 32], strides = [1, 1]} : vector<4x32xf32> to vector<2x32xf32>
    %13 = vector.extract_strided_slice %11 {offsets = [2, 0], sizes = [2, 32], strides = [1, 1]} : vector<4x32xf32> to vector<2x32xf32>
    %14 = arith.addf %12, %13 : vector<2x32xf32>
    %cst_11 = arith.constant 0.000000e+00 : f32
    %15 = vector.broadcast %cst_11 : f32 to vector<2x32xf32>
    %16 = arith.subf %15, %14 : vector<2x32xf32>
    %17 = math.exp %16 : vector<2x32xf32>
    %cst_12 = arith.constant 1.000000e+00 : f32
    %18 = vector.broadcast %cst_12 : f32 to vector<2x32xf32>
    %19 = arith.addf %18, %17 : vector<2x32xf32>
    %cst_13 = arith.constant 1.000000e+00 : f32
    %20 = vector.broadcast %cst_13 : f32 to vector<2x32xf32>
    %21 = arith.divf %20, %19 : vector<2x32xf32>
    %c0_14 = arith.constant 0 : index
    %c0_15 = arith.constant 0 : index
    %22 = vector.load %arg4[%c0_14, %c0_15] : memref<2x32xf32, #tpu.memory_space<vmem>>, vector<2x32xf32>
    tpu.vector_store %arg4[%c0_14, %c0_15], %21 {strides = array<i32>} : memref<2x32xf32, #tpu.memory_space<vmem>>, vector<2x32xf32>,
    return
  }
  func.func @transform_0(%arg0: i32) -> (i32, i32, i32) {
    %c0_i32 = arith.constant 0 : i32
    %c0_i32_0 = arith.constant 0 : i32
    %c0_i32_1 = arith.constant 0 : i32
    return %arg0, %c0_i32, %c0_i32_0 : i32, i32, i32
  }
  func.func @transform_1(%arg0: i32) -> (i32, i32) {
    %c0_i32 = arith.constant 0 : i32
    %c0_i32_0 = arith.constant 0 : i32
    %c0_i32_1 = arith.constant 0 : i32
    return %c0_i32, %c0_i32_0 : i32, i32
  }
  func.func @transform_2(%arg0: i32) -> (i32, i32) {
    %c0_i32 = arith.constant 0 : i32
    %c0_i32_0 = arith.constant 0 : i32
    %c0_i32_1 = arith.constant 0 : i32
    return %c0_i32, %c0_i32_0 : i32, i32
  }
  func.func @transform_3(%arg0: i32) -> (i32, i32) {
    %c0_i32 = arith.constant 0 : i32
    %c0_i32_0 = arith.constant 0 : i32
    return %arg0, %c0_i32 : i32, i32
  }
}

</mosaic_0001>

<bundles_post_ra>
// kernel: tpu_custom_call.1
= control target key start
LH: loop header
LB: loop body
LE: loop exit
PB: predicated region body
PF: predicated region fallthrough
CT: control target
= control target key end

     0   :  { %8 = vsyncpa [#allocation3], 0  ;;  %s564_s0 = inlined_call_operand.hbm [shape: f32[2,32,256], index: 0, kind: input, shape index: {}]   ;;  %s565_s1 = inlined_call_operand.vmem [shape: f32[32,2], index: 1, kind: input, shape index: {}]   ;;  %s566_s2 = inlined_call_operand.vmem [shape: f32[2,32], index: 2, kind: input, shape index: {}]   ;;  %s567_s3 = inlined_call_operand.hbm [shape: f32[2,32], index: 3, kind: output, shape index: {}]  }
   0x1   :  { %9 = vsyncpa [#allocation4], 0  ;;  %s484_s12 = smov [#allocation2]   ;;  %s436_s16 = scalar_lea.hbm %s564_s0, 2048 }
   0x2   :  { %s15_s13 = sshll.u32 %s484_s12, 4  ;;  %p437_p0 = scmp.ne.s32.totalorder %s564_s0, %s436_s16  ;;  %s16_s13 = int_to_ptr.vmem [resolvable:$true] %s15_s13 }
   0x3   :  { %p440_p1 = scmp.lt.u32.totalorder %s436_s16, %s564_s0 }
   0x5   :  { %p442_p2 = pnand %p440_p1, %p437_p0 }
   0x7   :  { %445 = shalt.err (!%p442_p2)
}
   0x8   :  { %s446_s21 = scalar_lea.vmem %s16_s13, 2048  ;;  %p451_p4 = scmp.lt.s32.totalorder %s16_s13, %s16_s13 }
   0x9   :  { %p447_p3 = scmp.ne.s32.totalorder %s16_s13, %s446_s21  ;;  %p452_p5 = scmp.lt.s32.totalorder %s446_s21, %s446_s21 }
   0xb   :  { %p453_p6 = por %p452_p5, %p451_p4 }
   0xd   :  { %p454_p7 = pnand %p453_p6, %p447_p3 }
   0xf   :  { %457 = shalt.err (!%p454_p7)
}
  0x10   :  { %s485_s22 = smov 256   ;;  %s486_s23 = smov 16  }
  0x11   :  { %21 = dma.hbm_to_vmem [thread:$0]  %s564_s0, 2048, %s16_s13, [#allocation3], %s485_s22, %s485_s22, %s486_s23  }
  0x12   :  { %480 = dma.done.wait [#allocation3], 2048  }
  0x13   :  { %481 = vsyncadd [#allocation3], 4294965248  ;;  %v37_v0 = vld [vmem:[#allocation2 + $0x40] sm:$0xff]  ;;  %v38_v1 = vld [vmem:[#allocation2 + $0x48] sm:$0xff]  ;;  %v487_v35 = vmov 0.0|0.0   ;;  %vm488_vm0 = vmmov 0   ;;  %v109_v45 = vlaneseq }
  0x14   :  { %v29_v2 = vld [vmem:[#allocation2] sm:$0xff]  ;;  %v57_v3 = vadd.f32 %v38_v1, %v37_v0  ;;  %v30_v4 = vld [vmem:[#allocation2 + $0x8] sm:$0xff]  ;;  %v39_v5 = vld [vmem:[#allocation2 + $0x50] sm:$0xff]  ;;  %v89_v27 = vmax.f32 %v37_v0, %v38_v1  ;;  %419 = vmatprep.subr.bf16.mxu0 %v487_v35  ;;  %v489_v39 = vmov 0.0   ;;  %vm120_vm1 = vcmask 130112   ;;  %s490_s7 = smov [#allocation5]  }
  0x15   :  { %v40_v6 = vld [vmem:[#allocation2 + $0x58] sm:$0xff]  ;;  %v45_v7 = vadd.f32 %v30_v4, %v29_v2  ;;  %v31_v8 = vld [vmem:[#allocation2 + $0x10] sm:$0xff]  ;;  %v41_v12 = vld [vmem:[#allocation2 + $0x60] sm:$0xff]  ;;  %v77_v25 = vmax.f32 %v29_v2, %v30_v4  ;;  %411 = vmatprep.mubr.msk.f32.mxu0 %vm488_vm0, %v489_v39  ;;  %414 = vmatprep.subr.mxu1 %v489_v39  ;;  %v110_v48 = vand.u32 127, %v109_v45  ;;  %v112_v50 = vshrl.u32 %v109_v45, 7  ;;  %s384_s8 = sshll.u32 %s490_s7, 4  ;;  %s385_s8 = int_to_ptr.vmem [resolvable:$true] %s384_s8 }
  0x16   :  { %v32_v9 = vld [vmem:[#allocation2 + $0x18] sm:$0xff]  ;;  %58 = vadd.xlane.f32.xlu1 %v57_v3  ;;  %v60_v10 = vadd.f32 %v40_v6, %v39_v5  ;;  %v42_v13 = vld [vmem:[#allocation2 + $0x68] sm:$0xff]  ;;  %v33_v14 = vld [vmem:[#allocation2 + $0x20] sm:$0xff]  ;;  %v92_v26 = vmax.f32 %v39_v5, %v40_v6  ;;  %416 = vmatprep.mubr.msk.f32.mxu1 %vm488_vm0, %v489_v39  ;;  %vm127_vm2 = vcmask 195712   ;;  %vm134_vm3 = vcmask 261312   ;;  %p463_p9 = scmp.lt.s32.totalorder %s385_s8, %s385_s8 }
  0x17   :  { %46 = vadd.xlane.f32.xlu0 %v45_v7  ;;  %v48_v11 = vadd.f32 %v32_v9, %v31_v8  ;;  %v34_v15 = vld [vmem:[#allocation2 + $0x28] sm:$0xff]  ;;  %v63_v16 = vadd.f32 %v42_v13, %v41_v12  ;;  %v43_v18 = vld [vmem:[#allocation2 + $0x70] sm:$0xff]  ;;  %v44_v19 = vld [vmem:[#allocation2 + $0x78] sm:$0xff]  ;;  %v80_v24 = vmax.f32 %v31_v8, %v32_v9  ;;  %v95_v28 = vmax.f32 %v41_v12, %v42_v13 }
  0x18   :  { %v51_v17 = vadd.f32 %v34_v15, %v33_v14  ;;  %v35_v20 = vld [vmem:[#allocation2 + $0x30] sm:$0xff]  ;;  %v36_v21 = vld [vmem:[#allocation2 + $0x38] sm:$0xff]  ;;  %v66_v22 = vadd.f32 %v44_v19, %v43_v18  ;;  %v83_v29 = vmax.f32 %v33_v14, %v34_v15  ;;  %v98_v30 = vmax.f32 %v43_v18, %v44_v19  ;;  %v209_v32 = vld [vmem:[%s565_s1] sm:$0xff] }
  0x19   :  { %v54_v23 = vadd.f32 %v36_v21, %v35_v20  ;;  %v86_v31 = vmax.f32 %v35_v20, %v36_v21  ;;  %v210_v33 = vld [vmem:[%s565_s1 + $0x8] sm:$0xff]  ;;  %v211_v36 = vld [vmem:[%s565_s1 + $0x10] sm:$0xff]  ;;  %v212_v37 = vld [vmem:[%s565_s1 + $0x18] sm:$0xff]  ;;  %v115_v51 = vadd.s32 4294967288, %v110_v48  ;;  %v122_v52 = vadd.s32 4294967280, %v110_v48 }
  0x1a   :  { %61 = vadd.xlane.f32.xlu1 %v60_v10  ;;  %v420_v34 = vpack.c.bf16 %v210_v33, %v209_v32  ;;  %v423_v38 = vpack.c.bf16 %v212_v37, %v211_v36  ;;  %v129_v54 = vadd.s32 4294967272, %v110_v48  ;;  %v113_v56 = vsub.s32 %v110_v48, %v112_v50 }
  0x1b   :  { %49 = vadd.xlane.f32.xlu0 %v48_v11  ;;  %v118_v57 = vsub.s32 %v115_v51, %v112_v50  ;;  %v125_v59 = vsub.s32 %v122_v52, %v112_v50  ;;  %vm155_vm4 = vcmask 1041409   ;;  %vm204_vm5 = vcmask 1043459  }
  0x1c   :  { %421 = vmatpush3.bf16.msra.mxu0 %v420_v34  ;;  %v132_v2 = vsub.s32 %v129_v54, %v112_v50  ;;  %vm207_vm6 = vcmask 1041408   ;;  %vm213_vm7 = vcmask 261120   ;;  %vm289_vm8 = vcmask 15360  }
  0x1d   :  { %422 = vmatprep.subr.bf16.mxu0 %v487_v35  ;;  %vm376_vm9 = vcmask 254976  }
  0x1e   :  { %64 = vadd.xlane.f32.xlu1 %v63_v16 }
  0x1f   :  { %52 = vadd.xlane.f32.xlu0 %v51_v17 }
  0x20   :  { %424 = vmatpush3.bf16.msra.mxu0 %v423_v38 }
  0x22   :  { %67 = vadd.xlane.f32.xlu1 %v66_v22 }
  0x23   :  { %55 = vadd.xlane.f32.xlu0 %v54_v23 }
  0x26   :  { %81 = vmax.xlane.f32.xlu1 %v80_v24 }
  0x27   :  { %78 = vmax.xlane.f32.xlu0 %v77_v25 }
  0x2a   :  { %93 = vmax.xlane.f32.xlu1 %v92_v26 }
  0x2b   :  { %90 = vmax.xlane.f32.xlu0 %v89_v27 }
  0x2e   :  { %96 = vmax.xlane.f32.xlu1 %v95_v28 }
  0x2f   :  { %84 = vmax.xlane.f32.xlu0 %v83_v29 }
  0x32   :  { %99 = vmax.xlane.f32.xlu1 %v98_v30 }
  0x33   :  { %87 = vmax.xlane.f32.xlu0 %v86_v31 }
  0xa3   :  { %v59_v40 = vpop.xlane.xlu1 %58 }
  0xa4   :  { %v47_v41 = vpop.xlane.xlu0 %46  ;;  %v73_v60 = vmul.f32 0.00390625, %v59_v40 }
  0xa5   :  { %v69_v61 = vmul.f32 0.00390625, %v47_v41  ;;  %v288_v41 = vld [vmem:[%s566_s2] sm:$0x3]  ;;  %s458_s2 = scalar_lea.vmem %s385_s8, 32 }
  0xa6   :  { %v139_v7 = vrot.slane %v73_v60, %v113_v56  ;;  %415 = vmatpush3.msk.msra.mxu1 %vm207_vm6, %v288_v41  ;;  %p459_p8 = scmp.ne.s32.totalorder %s385_s8, %s458_s2  ;;  %p464_p10 = scmp.lt.s32.totalorder %s458_s2, %s458_s2 }
  0xa7   :  { %v62_v42 = vpop.xlane.xlu1 %61  ;;  %v114_v8 = vrot.slane %v69_v61, %v113_v56 }
  0xa8   :  { %v50_v43 = vpop.xlane.xlu0 %49  ;;  %v74_v58 = vmul.f32 0.00390625, %v62_v42  ;;  %p465_p11 = por %p464_p10, %p463_p9 }
  0xa9   :  { %v70_v62 = vmul.f32 0.00390625, %v50_v43 }
  0xaa   :  { %v143_v6 = vrot.slane %v74_v58, %v118_v57  ;;  %p466_p12 = pnand %p465_p11, %p459_p8 }
  0xab   :  { %v65_v44 = vpop.xlane.xlu1 %64  ;;  %v119_v9 = vrot.slane %v70_v62, %v118_v57 }
  0xac   :  { %v53_v46 = vpop.xlane.xlu0 %52  ;;  %v75_v63 = vmul.f32 0.00390625, %v65_v44  ;;  %v144_v21 = vsel %vm120_vm1, %v143_v6, %v139_v7 }
  0xad   :  { %v71_v1 = vmul.f32 0.00390625, %v53_v46  ;;  %v121_v23 = vsel %vm120_vm1, %v119_v9, %v114_v8 }
  0xae   :  { %v148_v10 = vrot.slane %v75_v63, %v125_v59 }
  0xaf   :  { %v68_v47 = vpop.xlane.xlu1 %67  ;;  %v126_v12 = vrot.slane %v71_v1, %v125_v59 }
  0xb0   :  { %v56_v49 = vpop.xlane.xlu0 %55  ;;  %v76_v3 = vmul.f32 0.00390625, %v68_v47  ;;  %v149_v24 = vsel %vm127_vm2, %v148_v10, %v144_v21 }
  0xb1   :  { %v72_v5 = vmul.f32 0.00390625, %v56_v49  ;;  %v128_v26 = vsel %vm127_vm2, %v126_v12, %v121_v23 }
  0xb2   :  { %v153_v13 = vrot.slane %v76_v3, %v132_v2 }
  0xb3   :  { %v82_v53 = vpop.xlane.xlu1 %81  ;;  %v133_v17 = vrot.slane %v72_v5, %v132_v2 }
  0xb4   :  { %v79_v55 = vpop.xlane.xlu0 %78  ;;  %v173_v18 = vrot.slane %v82_v53, %v118_v57  ;;  %v154_v27 = vsel %vm134_vm3, %v153_v13, %v149_v24 }
  0xb5   :  { %v169_v19 = vrot.slane %v79_v55, %v113_v56  ;;  %v135_v31 = vsel %vm134_vm3, %v133_v17, %v128_v26 }
  0xb6   :  { %v156_v38 = vsel %vm155_vm4, %v154_v27, %v135_v31 }
  0xb7   :  { %v94_v0 = vpop.xlane.xlu1 %93  ;;  %v174_v32 = vsel %vm120_vm1, %v173_v18, %v169_v19 }
  0xb8   :  { %v91_v4 = vpop.xlane.xlu0 %90  ;;  %v192_v14 = vrot.slane %v94_v0, %v118_v57 }
  0xb9   :  { %v188_v15 = vrot.slane %v91_v4, %v113_v56 }
  0xbb   :  { %v97_v11 = vpop.xlane.xlu1 %96  ;;  %v193_v28 = vsel %vm120_vm1, %v192_v14, %v188_v15 }
  0xbc   :  { %v85_v16 = vpop.xlane.xlu0 %84  ;;  %v197_v20 = vrot.slane %v97_v11, %v125_v59 }
  0xbd   :  { %v178_v22 = vrot.slane %v85_v16, %v125_v59 }
  0xbe   :  { %v198_v33 = vsel %vm127_vm2, %v197_v20, %v193_v28 }
  0xbf   :  { %v100_v25 = vpop.xlane.xlu1 %99  ;;  %v179_v35 = vsel %vm127_vm2, %v178_v22, %v174_v32 }
  0xc0   :  { %v202_v29 = vrot.slane %v100_v25, %v132_v2  ;;  %v88_v30 = vpop.xlane.xlu0 %87 }
  0xc1   :  { %v183_v34 = vrot.slane %v88_v30, %v132_v2 }
  0xc2   :  { %v203_v36 = vsel %vm134_vm3, %v202_v29, %v198_v33 }
  0xc3   :  { %v184_v37 = vsel %vm134_vm3, %v183_v34, %v179_v35 }
  0xc4   :  { %v205_v39 = vsel %vm204_vm5, %v203_v36, %v184_v37 }
  0xc5   :  { %v208_v40 = vsel %vm207_vm6, %v156_v38, %v205_v39 }
  0xc6   :  { %412 = vmatmul.mubr.msk.f32.vlgmr.msra.gmra.mrb[0].mxu0 %vm213_vm7, %v208_v40 }
 0x199   :  { %v283_v42 = vpop.f32.mrb[0].mxu0 }
 0x19a   :  { %v287_v43 = vmax.f32 %v283_v42, 0.0  ;;  %v413_v44 = vpop.f32.mrb[1].mxu0 }
 0x19c   :  { %417 = vmatmul.mubr.msk.f32.vlgmr.msra.gmra.mrb[0].mxu1 %vm289_vm8, %v287_v43 }
 0x26f   :  { %v362_v45 = vpop.f32.mrb[0].mxu1 }
 0x270   :  { %v367_v46 = vrot.slane %v362_v45, 2  ;;  %v418_v47 = vpop.f32.mrb[1].mxu1 }
 0x272   :  { %v369_v48 = vadd.f32 %v367_v46, %v362_v45 }
 0x274   :  { %v370_v49 = vsub.f32 0.0, %v369_v48 }
 0x276   :  { %v371_v50 = vmul.f32 1.442695, %v370_v49 }
 0x278   :  { %432 = vpow2.f32 %v371_v50 }
 0x282   :  { %v433_v51 = vpop.eup %432 }
 0x283   :  { %v373_v52 = vadd.f32 1.0, %v433_v51 }
 0x285   :  { %434 = vrcp.f32 %v373_v52 }
 0x28f   :  { %v435_v53 = vpop.eup %434 }
 0x290   :  { %377 = vst.msk [vmem:[#allocation5] sm:$0x3] %vm376_vm9, %v435_v53 }
 0x291   :  { %469 = shalt.err (!%p466_p12)
}
 0x292   :  { %s470_s11 = scalar_lea.hbm %s567_s3, 32 }
 0x293   :  { %p471_p13 = scmp.ne.s32.totalorder %s567_s3, %s470_s11  ;;  %p474_p0 = scmp.lt.u32.totalorder %s470_s11, %s567_s3 }
 0x295   :  { %p476_p1 = pnand %p474_p0, %p471_p13 }
 0x297   :  { %479 = shalt.err (!%p476_p1)
}
 0x298   :  { %387 = dma.vmem_to_hbm [thread:$0]  %s385_s8, 32, %s567_s3, [#allocation4]  }
 0x299   :  { %482 = dma.done.wait [#allocation4], 32  }
 0x29a   :  { %483 = vsyncadd [#allocation4], 4294967264 }
 0x29b   :  { %391 = vsyncpa [#allocation3], 1 }
 0x29c   :  { %392 = vsyncpa [#allocation4], 1 }

</bundles_post_ra>
